<compile_context>
chip_gen: v7x
topology: tpu7x:2x2x1
jax: 0.10.0
libtpu: 0.0.40
codegen_flags: <defaults>
</compile_context>

<pallas_src>
import functools

import jax
import jax.numpy as jnp
from jax.experimental import pallas as pl
from jax.experimental.pallas import tpu as pltpu


DEFAULT_TM = 512
DEFAULT_TN = 512
DEFAULT_TK = 512


def _round_up(n, m):
    return ((n + m - 1) // m) * m


def _effective_tiles(B, X, Y, tm, tn, tk):
    """Clamp requested tiles to the (padded) problem size.

    tm stays a multiple of 16 (bf16 sublane packing), tn/tk multiples of 128
    (lane width); defaults are 512 so they are also 256-aligned for the
    v6e/v7x MXU.
    """
    tm_eff = min(tm, _round_up(B, 16))
    tn_eff = min(tn, _round_up(Y, 128))
    tk_eff = min(tk, _round_up(X, 128))
    return tm_eff, tn_eff, tk_eff


def mono_logic_gate_kernel(x_ref, w_ref, b_ref, o_ref):
    """Computes one (tm, tn) output tile; grid axis 2 is the K reduction.

    x_ref: (tm, tk) bf16, w_ref: (tn, tk) bf16 (already binarized 0/1),
    b_ref: (1, tn) f32, o_ref: (tm, tn) f32 (resident across k).
    """
    k = pl.program_id(2)

    @pl.when(k == 0)
    def _():
        # Bias-initialize the resident output block (replaces scratch init +
        # finalize add/copy).
        o_ref[...] = jnp.broadcast_to(b_ref[...], o_ref.shape)

    # Contract on the last axis of BOTH operands -> no XLU transpose of the
    # weight tile; bf16 MXU inputs with f32 accumulation.  The binarized
    # weights are exactly 0/1, so only x carries bf16 rounding.
    o_ref[...] += jax.lax.dot_general(
        x_ref[...], w_ref[...],
        dimension_numbers=(((1,), (1,)), ((), ())),
        preferred_element_type=jnp.float32)


def prepare_mono_logic_gate_params(weight, bias, *, tn=DEFAULT_TN, tk=DEFAULT_TK):
    """One-time parameter prep (hoisted out of the per-call path).

    Binarizes in f32 BEFORE the bf16 cast (small positive f32 weights must not
    round to 0 and flip the gate), casts to bf16 and zero-pads to tile
    multiples.  Padded weight rows/cols are exactly 0 -> no contribution.
    """
    Y, X = weight.shape
    _, tn_eff, tk_eff = _effective_tiles(1, X, Y, 16, tn, tk)
    Yp = _round_up(Y, tn_eff)
    Xp = _round_up(X, tk_eff)
    w_bin = (weight > 0).astype(jnp.bfloat16)                       # (Y, X) 0/1
    w_bin_padded = jnp.pad(w_bin, ((0, Yp - Y), (0, Xp - X)))
    bias_padded = jnp.pad(bias.astype(jnp.float32), (0, Yp - Y)).reshape(1, Yp)
    return w_bin_padded, bias_padded


@functools.partial(jax.jit,
                   static_argnames=("out_features", "tm", "tn", "tk"))
def mono_logic_gate_apply(x, w_bin_padded, bias_padded, *, out_features,
                          tm=DEFAULT_TM, tn=DEFAULT_TN, tk=DEFAULT_TK):
    """x: (B, X) f32.  w_bin_padded/bias_padded from prepare_*().  -> (B, Y) f32."""
    B, X = x.shape
    Yp, Xp = w_bin_padded.shape

    tm_eff, tn_eff, tk_eff = _effective_tiles(B, X, out_features, tm, tn, tk)
    Bp = _round_up(B, tm_eff)

    # x: cast to bf16 first so any padding copy is half-size; skip padding
    # entirely when shapes already match.
    xb = x.astype(jnp.bfloat16)
    if (Bp, Xp) != (B, X):
        xb = jnp.pad(xb, ((0, Bp - B), (0, Xp - X)))

    grid = (Bp // tm_eff, Yp // tn_eff, Xp // tk_eff)
    gi, gj, _gk = grid

    # Actual HBM traffic: x is re-streamed once per output-column tile (gj),
    # the weight once per batch tile (gi); output written once.
    cost = pl.CostEstimate(
        flops=2 * Bp * Xp * Yp,
        transcendentals=0,
        bytes_accessed=(2 * Bp * Xp * gj          # bf16 x re-streamed gj times
                        + 2 * Yp * Xp * gi        # bf16 weight re-streamed gi times
                        + 4 * Bp * Yp             # f32 output
                        + 4 * Yp * gi))           # f32 bias

    # Double-buffered bf16 inputs + resident f32 output block + bias.
    vmem_bytes = (2 * (tm_eff * tk_eff + tn_eff * tk_eff) * 2
                  + tm_eff * tn_eff * 4
                  + 2 * tn_eff * 4)
    vmem_limit = min(max(2 * vmem_bytes, 16 * 1024 * 1024), 48 * 1024 * 1024)

    out_padded = pl.pallas_call(
        mono_logic_gate_kernel,
        out_shape=jax.ShapeDtypeStruct((Bp, Yp), jnp.float32),
        grid_spec=pltpu.PrefetchScalarGridSpec(
            num_scalar_prefetch=0,
            grid=grid,
            in_specs=[
                pl.BlockSpec((tm_eff, tk_eff), lambda i, j, k: (i, k)),  # x
                pl.BlockSpec((tn_eff, tk_eff), lambda i, j, k: (j, k)),  # w (0/1 bf16)
                pl.BlockSpec((1, tn_eff), lambda i, j, k: (0, j)),       # bias
            ],
            out_specs=pl.BlockSpec((tm_eff, tn_eff), lambda i, j, k: (i, j)),
        ),
        compiler_params=pltpu.CompilerParams(
            dimension_semantics=("parallel", "parallel", "arbitrary"),
            vmem_limit_bytes=vmem_limit,
        ),
        cost_estimate=cost,
    )(xb, w_bin_padded, bias_padded)

    return out_padded[:B, :out_features]


def mono_logic_gate_layer(x, weight, bias, *, tm=DEFAULT_TM, tn=DEFAULT_TN,
                          tk=DEFAULT_TK):
    """Convenience wrapper: prep (ideally hoisted/cached by the caller) + apply."""
    Y = weight.shape[0]
    w_bin_padded, bias_padded = prepare_mono_logic_gate_params(
        weight, bias, tn=tn, tk=tk)
    return mono_logic_gate_apply(x, w_bin_padded, bias_padded,
                                 out_features=Y, tm=tm, tn=tn, tk=tk)


if __name__ == "__main__":
    # Small shapes consistent with nn.Linear(x=40, y=24), batch=6 (exercises
    # the padding / tile-clamping paths).
    B, X, Y = 6, 40, 24
    key = jax.random.PRNGKey(0)
    kx, kw, kb = jax.random.split(key, 3)

    bound = 1.0 / (X ** 0.5)   # nn.Linear default uniform(-1/sqrt(X), 1/sqrt(X))
    x = jax.random.normal(kx, (B, X), dtype=jnp.float32)
    weight = jax.random.uniform(kw, (Y, X), minval=-bound, maxval=bound,
                                dtype=jnp.float32)
    bias = jax.random.uniform(kb, (Y,), minval=-bound, maxval=bound,
                              dtype=jnp.float32)

    # Parameters are prepared once (binarize in f32 -> bf16, pad) and reused.
    w_bin_padded, bias_padded = prepare_mono_logic_gate_params(weight, bias)
    out = jax.block_until_ready(
        mono_logic_gate_apply(x, w_bin_padded, bias_padded, out_features=Y))
    assert out.shape == (B, Y)

    w_bin = (weight > 0).astype(jnp.float32)
    # Tight check vs a reference that applies the same bf16 rounding to x
    # (weights are exactly 0/1, so only x carries rounding).
    ref_bf = x.astype(jnp.bfloat16).astype(jnp.float32) @ w_bin.T + bias
    assert jnp.allclose(out, ref_bf, atol=1e-2, rtol=1e-3)
    # Loose sanity check vs the pure-f32 reference.
    ref_f32 = x @ w_bin.T + bias
    assert jnp.allclose(out, ref_f32, atol=0.5, rtol=2e-2)

    print("KERNEL_OK")
</pallas_src>

<mosaic_0001>
module attributes {stable_mosaic.version = 11 : i64} {
  func.func @mono_logic_gate_kernel(%arg0: i32, %arg1: i32, %arg2: i32, %arg3: memref<16x128xbf16, #tpu.memory_space<vmem>>, %arg4: memref<128x128xbf16, #tpu.memory_space<vmem>>, %arg5: memref<1x128xf32, #tpu.memory_space<vmem>>, %arg6: memref<16x128xf32, #tpu.memory_space<vmem>>) attributes {dimension_semantics = [#tpu.dimension_semantics<parallel>, #tpu.dimension_semantics<parallel>, #tpu.dimension_semantics<arbitrary>], iteration_bounds = array<i64: 1, 1, 1>, scalar_prefetch = 0 : i64, scratch_operands = 0 : i64, tpu.core_type = #tpu.core_type<tc>, window_params = [{transform_indices = @transform_0, window_bounds = array<i64: 16, 128>}, {transform_indices = @transform_1, window_bounds = array<i64: 128, 128>}, {transform_indices = @transform_2, window_bounds = array<i64: 1, 128>}, {transform_indices = @transform_3, window_bounds = array<i64: 16, 128>}]} {
    %c0_i32 = arith.constant 0 : i32
    %0 = arith.cmpi eq, %arg2, %c0_i32 : i32
    %1 = arith.extui %0 : i1 to i32
    %c0_i32_0 = arith.constant 0 : i32
    %2 = arith.cmpi ne, %1, %c0_i32_0 : i32
    scf.if %2 {
      %c0_8 = arith.constant 0 : index
      %c0_9 = arith.constant 0 : index
      %9 = vector.load %arg5[%c0_8, %c0_9] : memref<1x128xf32, #tpu.memory_space<vmem>>, vector<1x128xf32>
      %10 = vector.shape_cast %9 : vector<1x128xf32> to vector<1x128xf32>
      %11 = vector.broadcast %10 : vector<1x128xf32> to vector<16x128xf32>
      %c0_10 = arith.constant 0 : index
      %c0_11 = arith.constant 0 : index
      %12 = vector.load %arg6[%c0_10, %c0_11] : memref<16x128xf32, #tpu.memory_space<vmem>>, vector<16x128xf32>
      tpu.vector_store %arg6[%c0_10, %c0_11], %11 {strides = array<i32>} : memref<16x128xf32, #tpu.memory_space<vmem>>, vector<16x128xf32>,
    } else {
    }
    %c0 = arith.constant 0 : index
    %c0_1 = arith.constant 0 : index
    %3 = vector.load %arg6[%c0, %c0_1] : memref<16x128xf32, #tpu.memory_space<vmem>>, vector<16x128xf32>
    %c0_2 = arith.constant 0 : index
    %c0_3 = arith.constant 0 : index
    %4 = vector.load %arg3[%c0_2, %c0_3] : memref<16x128xbf16, #tpu.memory_space<vmem>>, vector<16x128xbf16>
    %c0_4 = arith.constant 0 : index
    %c0_5 = arith.constant 0 : index
    %5 = vector.load %arg4[%c0_4, %c0_5] : memref<128x128xbf16, #tpu.memory_space<vmem>>, vector<128x128xbf16>
    %cst = arith.constant dense<0.000000e+00> : vector<16x128xf32>
    %6 = tpu.matmul %4, %5, %cst {dimension_numbers = #tpu.dot_dimension_numbers<[1], [1], [0], [0], [0, 0, 1, 0], [], []>} : vector<16x128xbf16>, vector<128x128xbf16>, vector<16x128xf32> -> vector<16x128xf32>
    %7 = arith.addf %3, %6 : vector<16x128xf32>
    %c0_6 = arith.constant 0 : index
    %c0_7 = arith.constant 0 : index
    %8 = vector.load %arg6[%c0_6, %c0_7] : memref<16x128xf32, #tpu.memory_space<vmem>>, vector<16x128xf32>
    tpu.vector_store %arg6[%c0_6, %c0_7], %7 {strides = array<i32>} : memref<16x128xf32, #tpu.memory_space<vmem>>, vector<16x128xf32>,
    return
  }
  func.func @transform_0(%arg0: i32, %arg1: i32, %arg2: i32) -> (i32, i32) {
    %c0_i32 = arith.constant 0 : i32
    return %arg0, %arg2 : i32, i32
  }
  func.func @transform_1(%arg0: i32, %arg1: i32, %arg2: i32) -> (i32, i32) {
    %c0_i32 = arith.constant 0 : i32
    return %arg1, %arg2 : i32, i32
  }
  func.func @transform_2(%arg0: i32, %arg1: i32, %arg2: i32) -> (i32, i32) {
    %c0_i32 = arith.constant 0 : i32
    %c0_i32_0 = arith.constant 0 : i32
    return %c0_i32, %arg1 : i32, i32
  }
  func.func @transform_3(%arg0: i32, %arg1: i32, %arg2: i32) -> (i32, i32) {
    %c0_i32 = arith.constant 0 : i32
    return %arg0, %arg1 : i32, i32
  }
}

</mosaic_0001>

<bundles_post_ra>
// kernel: mono_logic_gate_apply.1
= control target key start
LH: loop header
LB: loop body
LE: loop exit
PB: predicated region body
PF: predicated region fallthrough
CT: control target
= control target key end

     0   :  { %8 = vsyncpa [#allocation3], 0  ;;  %s243_s12 = smov [#allocation2]   ;;  %s292_s0 = inlined_call_operand.vmem [shape: bf16[16,128], index: 0, kind: input, shape index: {}]   ;;  %s293_s1 = inlined_call_operand.hbm [shape: bf16[128,128], index: 1, kind: input, shape index: {}]   ;;  %s294_s2 = inlined_call_operand.vmem [shape: f32[1,128], index: 2, kind: input, shape index: {}]   ;;  %s295_s3 = inlined_call_operand.vmem [shape: f32[16,128], index: 3, kind: output, shape index: {}]  }
   0x1   :  { %s16_s13 = sshll.u32 %s243_s12, 4  ;;  %s219_s16 = scalar_lea.hbm %s293_s1, 1024  ;;  %s17_s13 = int_to_ptr.vmem [resolvable:$true] %s16_s13 }
   0x2   :  { %p220_p0 = scmp.ne.s32.totalorder %s293_s1, %s219_s16  ;;  %p223_p1 = scmp.lt.u32.totalorder %s219_s16, %s293_s1 }
   0x4   :  { %p225_p2 = pnand %p223_p1, %p220_p0 }
   0x6   :  { %228 = shalt.err (!%p225_p2)
}
   0x7   :  { %s229_s21 = scalar_lea.vmem %s17_s13, 1024  ;;  %p234_p4 = scmp.lt.s32.totalorder %s17_s13, %s17_s13 }
   0x8   :  { %p230_p3 = scmp.ne.s32.totalorder %s17_s13, %s229_s21  ;;  %p235_p5 = scmp.lt.s32.totalorder %s229_s21, %s229_s21 }
   0xa   :  { %p236_p6 = por %p235_p5, %p234_p4 }
   0xc   :  { %p237_p7 = pnand %p236_p6, %p230_p3 }
   0xe   :  { %240 = shalt.err (!%p237_p7)
}
   0xf   :  { %s244_s22 = smov 64   ;;  %s245_s23 = smov 4  }
  0x10   :  { %22 = dma.hbm_to_vmem [thread:$0]  %s293_s1, 1024, %s17_s13, [#allocation3], %s244_s22, %s244_s22, %s245_s23  }
  0x11   :  { %241 = dma.done.wait [#allocation3], 1024  }
  0x12   :  { %242 = vsyncadd [#allocation3], 4294966272  ;;  %v246_v0 = vmov 0.0   ;;  %vm247_vm0 = vmmov 0   ;;  %v210_v1 = vld [vmem:[#allocation2] sm:$0xff]   ;;  %v211_v2 = vld [vmem:[#allocation2 + $0x8] sm:$0xff]  }
  0x13   :  { %185 = vmatprep.subr.bf16.mxu0 %v246_v0  ;;  %201 = vmatprep.mubr.msk.bf16.mxu0 %vm247_vm0, %v246_v0  ;;  %v212_v3 = vld [vmem:[#allocation2 + $0x10] sm:$0xff]   ;;  %v213_v4 = vld [vmem:[#allocation2 + $0x18] sm:$0xff]   ;;  %v214_v5 = vld [vmem:[#allocation2 + $0x20] sm:$0xff]  }
  0x14   :  { %186 = vmatpush3.bf16.xpose.msra.mxu0 %v210_v1  ;;  %v215_v6 = vld [vmem:[#allocation2 + $0x28] sm:$0xff]   ;;  %v216_v7 = vld [vmem:[#allocation2 + $0x30] sm:$0xff]   ;;  %v217_v8 = vld [vmem:[#allocation2 + $0x38] sm:$0xff]  }
  0x15   :  { %187 = vmatprep.subr.bf16.mxu0 %v246_v0  ;;  %v218_v9 = vld [vmem:[%s292_s0] sm:$0xff]  }
  0x16   :  { %v166_v10 = vld [vmem:[%s294_s2] ss:$0 sm:$0xff] }
  0x1c   :  { %188 = vmatpush3.bf16.xpose.msra.mxu0 %v211_v2 }
  0x1d   :  { %189 = vmatprep.subr.bf16.mxu0 %v246_v0 }
  0x24   :  { %190 = vmatpush3.bf16.xpose.msra.mxu0 %v212_v3 }
  0x25   :  { %191 = vmatprep.subr.bf16.mxu0 %v246_v0 }
  0x2c   :  { %192 = vmatpush3.bf16.xpose.msra.mxu0 %v213_v4 }
  0x2d   :  { %193 = vmatprep.subr.bf16.mxu0 %v246_v0 }
  0x34   :  { %194 = vmatpush3.bf16.xpose.msra.mxu0 %v214_v5 }
  0x35   :  { %195 = vmatprep.subr.bf16.mxu0 %v246_v0 }
  0x3c   :  { %196 = vmatpush3.bf16.xpose.msra.mxu0 %v215_v6 }
  0x3d   :  { %197 = vmatprep.subr.bf16.mxu0 %v246_v0 }
  0x44   :  { %198 = vmatpush3.bf16.xpose.msra.mxu0 %v216_v7 }
  0x45   :  { %199 = vmatprep.subr.bf16.mxu0 %v246_v0 }
  0x4c   :  { %200 = vmatpush3.bf16.xpose.msra.mxu0 %v217_v8 }
  0x53   :  { %202 = vmatmul.mubr.bf16.vlgmr.msra.gmra.mrb[0].mxu0 %v218_v9 }
 0x126   :  { %v150_v11 = vpop.f32.mrb[0].mxu0 }
 0x127   :  { %v157_v12 = vadd.f32 %v166_v10, %v150_v11  ;;  %v203_v13 = vpop.f32.mrb[1].mxu0 }
 0x128   :  { %v153_v14 = vpop.f32.mrb[2].mxu0 }
 0x129   :  { %159 = vst [vmem:[%s295_s3] sm:$0xff] %v157_v12  ;;  %v158_v15 = vadd.f32 %v166_v10, %v153_v14  ;;  %v204_v16 = vpop.f32.mrb[3].mxu0 }
 0x12b   :  { %160 = vst [vmem:[%s295_s3 + $0x8] sm:$0xff] %v158_v15 }
 0x12c   :  { %165 = vsyncpa [#allocation3], 1 }

</bundles_post_ra>
